<compile_context>
chip_gen: v6e
topology: v6e:2x2x1
jax: 0.10.0
libtpu: 0.0.40
codegen_flags: <defaults>
</compile_context>

<pallas_src>
import jax
import jax.numpy as jnp
from jax import lax
from jax.experimental import pallas as pl
from jax.experimental.pallas import tpu as pltpu


def net_kernel(x_ref, w_ref, bias_ref, b_ref, out_ref):
    # x: [B, In], w: [H, In] (native PyTorch nn.Linear layout, no wrapper
    # transpose).  Contract both operands over their shared In axis on the MXU.
    y = lax.dot_general(
        x_ref[...],
        w_ref[...],
        dimension_numbers=(((1,), (1,)), ((), ())),   # x @ w.T
        preferred_element_type=jnp.float32,
    )
    # + bias row, ReLU (VPU).
    y = jnp.maximum(y + bias_ref[...], 0.0)
    # Single cross-lane/sublane reduction; scalar parameter b read from SMEM.
    out_ref[...] = jnp.full_like(out_ref[...], jnp.sum(y) + b_ref[0])


@jax.jit
def net_forward(x, w, bias, b):
    """x: [B, In] f32, w: [H, In] (PyTorch nn.Linear layout), bias: [H], b: [1].
    Returns scalar f32 == relu(x @ w.T + bias).sum() + b[0]."""
    B, In = x.shape
    H, In_w = w.shape
    assert In == In_w

    x_f = x.astype(jnp.float32)                       # unpadded [B, In]
    w_f = w.astype(jnp.float32)                       # unpadded [H, In], no .T
    bias_f = bias.astype(jnp.float32).reshape(1, H)   # bitcast-level under jit
    b_s = b.astype(jnp.float32).reshape(1)

    cost = pl.CostEstimate(
        flops=2 * B * In * H,
        transcendentals=0,
        bytes_accessed=(B * In + H * In + H + 1 + 1) * 4,
    )

    out = pl.pallas_call(
        net_kernel,
        out_shape=jax.ShapeDtypeStruct((1, 1), jnp.float32),
        # Single invocation (no grid): whole problem fits trivially in VMEM on
        # v5e / v6e / v7x, so no per-step pipeline overhead.
        in_specs=[
            pl.BlockSpec(memory_space=pltpu.MemorySpace.VMEM),  # x    [B, In]
            pl.BlockSpec(memory_space=pltpu.MemorySpace.VMEM),  # w    [H, In]
            pl.BlockSpec(memory_space=pltpu.MemorySpace.VMEM),  # bias [1, H]
            pl.BlockSpec(memory_space=pltpu.MemorySpace.SMEM),  # b scalar [1]
        ],
        out_specs=pl.BlockSpec(memory_space=pltpu.MemorySpace.VMEM),
        cost_estimate=cost,
    )(x_f, w_f, bias_f, b_s)
    return out[0, 0]


if __name__ == "__main__":
    # Shapes implied by the module: x is [batch, input_size].
    batch, input_size, hidden_size = 16, 32, 32

    key = jax.random.PRNGKey(0)
    kx, kw, kb, kp = jax.random.split(key, 4)

    x = jax.random.normal(kx, (batch, input_size), dtype=jnp.float32)

    # Deterministic parameter init (mirrors nn.Linear's uniform init range).
    limit = 1.0 / (input_size ** 0.5)
    w = jax.random.uniform(kw, (hidden_size, input_size),
                           minval=-limit, maxval=limit, dtype=jnp.float32)
    bias = jax.random.uniform(kb, (hidden_size,),
                              minval=-limit, maxval=limit, dtype=jnp.float32)
    # self.b = Parameter(FloatTensor(1).uniform_(0, 1))
    b = jax.random.uniform(kp, (1,), minval=0.0, maxval=1.0, dtype=jnp.float32)

    result = jax.block_until_ready(net_forward(x, w, bias, b))

    # Pure-JAX reference check.
    ref = jnp.sum(jnp.maximum(x @ w.T + bias, 0.0)) + b[0]
    assert jnp.allclose(result, ref, rtol=1e-5, atol=1e-5), (result, ref)

    print("KERNEL_OK")
</pallas_src>

<mosaic_0001>
module attributes {stable_mosaic.version = 11 : i64} {
  func.func @net_kernel(%arg0: memref<16x32xf32, #tpu.memory_space<vmem>>, %arg1: memref<32x32xf32, #tpu.memory_space<vmem>>, %arg2: memref<1x32xf32, #tpu.memory_space<vmem>>, %arg3: memref<1xf32, #tpu.memory_space<smem>>, %arg4: memref<1x1xf32, #tpu.memory_space<vmem>>) attributes {dimension_semantics = [], scalar_prefetch = 0 : i64, scratch_operands = 0 : i64, tpu.core_type = #tpu.core_type<tc>} {
    %c0 = arith.constant 0 : index
    %c0_0 = arith.constant 0 : index
    %0 = vector.load %arg0[%c0, %c0_0] : memref<16x32xf32, #tpu.memory_space<vmem>>, vector<16x32xf32>
    %c0_1 = arith.constant 0 : index
    %c0_2 = arith.constant 0 : index
    %1 = vector.load %arg1[%c0_1, %c0_2] : memref<32x32xf32, #tpu.memory_space<vmem>>, vector<32x32xf32>
    %cst = arith.constant dense<0.000000e+00> : vector<16x32xf32>
    %2 = tpu.matmul %0, %1, %cst {dimension_numbers = #tpu.dot_dimension_numbers<[1], [1], [0], [0], [0, 0, 1, 0], [], []>} : vector<16x32xf32>, vector<32x32xf32>, vector<16x32xf32> -> vector<16x32xf32>
    %c0_3 = arith.constant 0 : index
    %c0_4 = arith.constant 0 : index
    %3 = vector.load %arg2[%c0_3, %c0_4] : memref<1x32xf32, #tpu.memory_space<vmem>>, vector<1x32xf32>
    %4 = vector.broadcast %3 : vector<1x32xf32> to vector<16x32xf32>
    %5 = arith.addf %2, %4 : vector<16x32xf32>
    %cst_5 = arith.constant 0.000000e+00 : f32
    %6 = vector.broadcast %cst_5 : f32 to vector<16x32xf32>
    %7 = arith.maximumf %5, %6 : vector<16x32xf32>
    %8 = vector.shape_cast %7 : vector<16x32xf32> to vector<1x16x32xf32>
    %cst_6 = arith.constant dense<0.000000e+00> : vector<1xf32>
    %9 = vector.multi_reduction <add>, %8, %cst_6 [1, 2] : vector<1x16x32xf32> to vector<1xf32>
    %10 = vector.shape_cast %9 : vector<1xf32> to vector<1x1x1xf32>
    %11 = vector.extract %10[0, 0, 0] : f32 from vector<1x1x1xf32>
    %c0_7 = arith.constant 0 : index
    %12 = memref.load %arg3[%c0_7] : memref<1xf32, #tpu.memory_space<smem>>
    %13 = arith.addf %11, %12 : f32
    %14 = vector.broadcast %13 : f32 to vector<1x1xf32>
    %c0_8 = arith.constant 0 : index
    %c0_9 = arith.constant 0 : index
    %15 = vector.load %arg4[%c0_8, %c0_9] : memref<1x1xf32, #tpu.memory_space<vmem>>, vector<1x1xf32>
    tpu.vector_store %arg4[%c0_8, %c0_9], %14 {strides = array<i32>} : memref<1x1xf32, #tpu.memory_space<vmem>>, vector<1x1xf32>,
    return
  }
}

</mosaic_0001>

<bundles_post_ra>
// kernel: net_forward.1
= control target key start
LH: loop header
LB: loop body
LE: loop exit
PB: predicated region body
PF: predicated region fallthrough
CT: control target
= control target key end

     0   :  { %10 = vsyncpa [#allocation4], 0  ;;  %s343_s0 = inlined_call_operand.hbm [shape: f32[16,32], index: 0, kind: input, shape index: {}]   ;;  %s344_s1 = inlined_call_operand.hbm [shape: f32[32,32], index: 1, kind: input, shape index: {}]   ;;  %s345_s2 = inlined_call_operand.vmem [shape: f32[1,32], index: 2, kind: input, shape index: {}]   ;;  %s346_s3 = inlined_call_operand.<no memory space> [shape: f32[1], index: 3, kind: input, shape index: {}]   ;;  %s347_s4 = inlined_call_operand.hbm [shape: f32[1,1], index: 4, kind: output, shape index: {}]  }
   0x1   :  { %11 = vsyncpa [#allocation7], 0 }
   0x2   :  { %12 = vsyncpa [#allocation5], 0  ;;  %s286_s15 = smov [#allocation3]  }
   0x3   :  { %s18_s16 = sshll.u32 %s286_s15, 4  ;;  %s19_s16 = int_to_ptr.vmem [resolvable:$true] %s18_s16 }
   0x4   :  { %s228_s17 = scalar_lea.vmem %s19_s16, 256  ;;  %p233_p1 = scmp.lt.s32.totalorder %s19_s16, %s19_s16 }
   0x5   :  { %p229_p0 = scmp.ne.s32.totalorder %s19_s16, %s228_s17  ;;  %p234_p2 = scmp.lt.s32.totalorder %s228_s17, %s228_s17 }
   0x7   :  { %p235_p3 = por %p234_p2, %p233_p1 }
   0x9   :  { %p236_p4 = pnand %p235_p3, %p229_p0 }
   0xb   :  { %239 = shalt.err (!%p236_p4)
}
   0xc   :  { %s287_s18 = smov 128   ;;  %s288_s19 = smov 8  }
   0xd   :  { %24 = dma.hbm_to_vmem [thread:$0]  %s343_s0, 256, %s19_s16, [#allocation4], %s287_s18, %s287_s18, %s288_s19  }
   0xe   :  { %s289_s22 = smov [#allocation6]  }
   0xf   :  { %s30_s23 = sshll.u32 %s289_s22, 4  ;;  %s31_s23 = int_to_ptr.vmem [resolvable:$true] %s30_s23 }
  0x10   :  { %s248_s24 = scalar_lea.vmem %s31_s23, 512  ;;  %p253_p6 = scmp.lt.s32.totalorder %s31_s23, %s31_s23 }
  0x11   :  { %p249_p5 = scmp.ne.s32.totalorder %s31_s23, %s248_s24  ;;  %p254_p7 = scmp.lt.s32.totalorder %s248_s24, %s248_s24 }
  0x13   :  { %p255_p8 = por %p254_p7, %p253_p6 }
  0x15   :  { %p256_p9 = pnand %p255_p8, %p249_p5 }
  0x17   :  { %259 = shalt.err (!%p256_p9)
}
  0x18   :  { %36 = dma.hbm_to_vmem [thread:$0]  %s344_s1, 512, %s31_s23, [#allocation7], %s287_s18, %s287_s18, %s288_s19  }
  0x19   :  { %280 = dma.done.wait [#allocation4], 256  }
  0x1a   :  { %281 = vsyncadd [#allocation4], 4294967040 }
  0x1b   :  { %282 = dma.done.wait [#allocation7], 512  }
  0x1c   :  { %283 = vsyncadd [#allocation7], 4294966784  ;;  %vm60_vm0 = vcmask 261120   ;;  %v52_v0 = vld [vmem:[#allocation6 + $0x18] sm:$0xff]  ;;  %v51_v1 = vld [vmem:[#allocation6 + $0x10] sm:$0xff]  ;;  %vm171_vm1 = vcmask 0  }
  0x1d   :  { %202 = vmatprep.subr.msk.mxu0 %vm60_vm0, %v52_v0  ;;  %v47_v2 = vld [vmem:[#allocation3] sm:$0xff]  ;;  %v50_v3 = vld [vmem:[#allocation6 + $0x8] sm:$0xff]  ;;  %v49_v4 = vld [vmem:[#allocation6] sm:$0xff] }
  0x1e   :  { %203 = vmatpush3.xpose.msk.msra.mxu0 %vm60_vm0, %v52_v0  ;;  %210 = vmatprep.mubr.msk.f32.mxu0 %vm60_vm0, %v47_v2  ;;  %v48_v5 = vld [vmem:[#allocation3 + $0x8] sm:$0xff]  ;;  %v189_v6 = vld [vmem:[%s345_s2] ss:$0 sm:$0xff]  ;;  %s290_s2 = smov [#allocation8]  }
  0x1f   :  { %204 = vmatprep.subr.msk.mxu0 %vm60_vm0, %v51_v1  ;;  %s179_s27 = sshll.u32 %s290_s2, 4  ;;  %s180_s27 = int_to_ptr.vmem [resolvable:$true] %s179_s27 }
  0x20   :  { %s260_s6 = scalar_lea.vmem %s180_s27, 16  ;;  %s264_s7 = scalar_lea.vmem %s180_s27, 32 }
  0x21   :  { %p261_p10 = scmp.ne.s32.totalorder %s180_s27, %s260_s6  ;;  %p265_p11 = scmp.lt.s32.totalorder %s180_s27, %s180_s27 }
  0x22   :  { %205 = vmatpush3.xpose.msk.msra.mxu0 %vm60_vm0, %v51_v1  ;;  %p266_p12 = scmp.lt.s32.totalorder %s264_s7, %s260_s6 }
  0x23   :  { %206 = vmatprep.subr.msk.mxu0 %vm60_vm0, %v50_v3 }
  0x24   :  { %p267_p13 = por %p266_p12, %p265_p11 }
  0x26   :  { %207 = vmatpush3.xpose.msk.msra.mxu0 %vm60_vm0, %v50_v3  ;;  %p268_p0 = pnand %p267_p13, %p261_p10 }
  0x27   :  { %208 = vmatprep.subr.msk.mxu0 %vm60_vm0, %v49_v4 }
  0x2a   :  { %209 = vmatpush3.xpose.msk.msra.mxu0 %vm60_vm0, %v49_v4 }
  0x2d   :  { %211 = vmatmul.mubr.msk.f32.vlgmr.msra.gmra.mxu0 %vm60_vm0, %v48_v5 }
  0xed   :  { %v212_v7 = vpop.f32.mrf.mxu0 }
  0xee   :  { %v151_v8 = vadd.f32 %v212_v7, %v189_v6 }
  0xef   :  { %v145_v9 = vpop.f32.mrf.mxu0 }
  0xf0   :  { %v155_v10 = vmax.f32 %v151_v8, 0.0  ;;  %v146_v11 = vadd.f32 %v189_v6, %v145_v9 }
  0xf2   :  { %v154_v12 = vmax.f32 %v146_v11, 0.0  ;;  %v157_v14 = vsel %vm60_vm0, %v155_v10, 0.0 }
  0xf4   :  { %v156_v13 = vsel %vm60_vm0, %v154_v12, 0.0 }
  0xf5   :  { %v158_v15 = vadd.f32 %v157_v14, %v156_v13 }
  0xf7   :  { %159 = vadd.xlane.f32.xlu0 %v158_v15 }
 0x180   :  { %v160_v16 = vpop.xlane.xlu0 %159 }
 0x181   :  { %v161_v17 = vrot.slane %v160_v16, 4 }
 0x183   :  { %v162_v18 = vadd.f32 %v161_v17, %v160_v16 }
 0x185   :  { %v163_v19 = vrot.slane %v162_v18, 2 }
 0x187   :  { %v164_v20 = vadd.f32 %v163_v19, %v162_v18 }
 0x189   :  { %v165_v21 = vrot.slane %v164_v20, 1 }
 0x18b   :  { %v166_v22 = vadd.f32 %v165_v21, %v164_v20 }
 0x18d   :  { %213 = vpush %v166_v22 }
 0x1be   :  { %s214_s28 = spop %213 }
 0x1bf   :  { %s169_s5 = sadd.f32 %s214_s28, %s346_s3 }
 0x1c1   :  { %v170_v23 = vstv %s169_s5 }
 0x1c2   :  { %172 = vst.msk [vmem:[#allocation8] sm:$0x1] %vm171_vm1, %v170_v23 }
 0x1c3   :  { %271 = shalt.err (!%p268_p0)
}
 0x1c4   :  { %182 = dma.vmem_to_hbm [thread:$0]  %s180_s27, 16, %s347_s4, [#allocation5]  }
 0x1c5   :  { %284 = dma.done.wait [#allocation5], 16  }
 0x1c6   :  { %285 = vsyncadd [#allocation5], 4294967280 }
 0x1c7   :  { %186 = vsyncpa [#allocation4], 1 }
 0x1c8   :  { %187 = vsyncpa [#allocation7], 1 }
 0x1c9   :  { %188 = vsyncpa [#allocation5], 1 }

</bundles_post_ra>
